<compile_context>
chip_gen: v7x
topology: tpu7x:2x2x1
jax: 0.10.0
libtpu: 0.0.40
codegen_flags: <defaults>
</compile_context>

<pallas_src>
import jax
import jax.numpy as jnp
from jax.experimental import pallas as pl
from jax.experimental.pallas import tpu as pltpu


def conv_block_forward(x_nchw, weight_oihw, bias):
    """ConvBlock forward: ReLU(Conv2d(x, W, b; k=3, s=1, p=1)). NCHW in / NCHW out."""
    N, Cin, H, W = x_nchw.shape
    Cout = weight_oihw.shape[0]
    HW = H * W
    LPAD = W + 1                                    # covers the most-negative tap offset
    PADW = pl.cdiv(LPAD + HW + W + 1, 128) * 128    # lane-dense zero-extended flat width

    # ---- wrapper glue (cheap; no transpose / layout change of the activations) ----
    x_flat = x_nchw.reshape(N, Cin, HW).astype(jnp.bfloat16)
    x_pad = jnp.pad(x_flat, ((0, 0), (0, 0), (LPAD, PADW - LPAD - HW)))

    # weight (Cout, Cin, 3, 3) -> (Cout, 9*Cin); column order (dy, dx, ci) matches
    # the im2col row order built inside the kernel.
    w_mat = (jnp.transpose(weight_oihw, (0, 2, 3, 1))
             .reshape(Cout, 9 * Cin).astype(jnp.bfloat16))
    b_col = bias.reshape(Cout, 1).astype(jnp.float32)

    # 0/1 masks killing the interior wrap-around columns of the flat shifts.
    w_idx = jnp.arange(HW, dtype=jnp.int32) % W
    mask_l = (w_idx > 0).astype(jnp.bfloat16).reshape(1, HW)       # for dx == 0 taps
    mask_r = (w_idx < W - 1).astype(jnp.bfloat16).reshape(1, HW)   # for dx == 2 taps

    def kernel(x_ref, w_ref, ml_ref, mr_ref, b_ref, o_ref):
        x = x_ref[0]                       # (Cin, PADW) bf16, zero-extended flat image
        m_left = ml_ref[...]               # (1, HW) bf16
        m_right = mr_ref[...]              # (1, HW) bf16

        # In-register im2col: 9 contiguous lane slices of the flat image.
        taps = []
        for dy in range(3):
            for dx in range(3):
                off = LPAD + (dy - 1) * W + (dx - 1)      # static, always >= 0
                p = x[:, off:off + HW]                    # (Cin, HW) contiguous slice
                if dx == 0:
                    p = p * m_left
                elif dx == 2:
                    p = p * m_right
                taps.append(p)
        patch = jnp.concatenate(taps, axis=0)             # (9*Cin, HW) bf16

        # One fat bf16 MXU matmul, f32 accumulation; lane-dense (Cout, HW) output.
        acc = jnp.dot(w_ref[...], patch, preferred_element_type=jnp.float32)
        acc = acc + b_ref[...]                            # bias broadcast over lanes (f32)
        o_ref[0] = jnp.maximum(acc, 0.0).astype(o_ref.dtype)   # ReLU epilogue in f32

    flops = 2 * N * Cout * (9 * Cin) * HW
    bytes_accessed = (x_pad.size * 2 + w_mat.size * 2 + mask_l.size * 2
                      + mask_r.size * 2 + b_col.size * 4 + N * Cout * HW * 4)

    out_flat = pl.pallas_call(
        kernel,
        out_shape=jax.ShapeDtypeStruct((N, Cout, HW), jnp.float32),
        grid_spec=pltpu.PrefetchScalarGridSpec(
            num_scalar_prefetch=0,
            grid=(N,),
            in_specs=[
                pl.BlockSpec((1, Cin, PADW), lambda n: (n, 0, 0)),
                pl.BlockSpec((Cout, 9 * Cin), lambda n: (0, 0)),   # VMEM-resident weight
                pl.BlockSpec((1, HW), lambda n: (0, 0)),
                pl.BlockSpec((1, HW), lambda n: (0, 0)),
                pl.BlockSpec((Cout, 1), lambda n: (0, 0)),
            ],
            out_specs=pl.BlockSpec((1, Cout, HW), lambda n: (n, 0, 0)),
        ),
        compiler_params=pltpu.CompilerParams(
            dimension_semantics=("parallel",),
            vmem_limit_bytes=32 * 1024 * 1024,
        ),
        cost_estimate=pl.CostEstimate(
            flops=flops, transcendentals=0, bytes_accessed=bytes_accessed),
    )(x_pad, w_mat, mask_l, mask_r, b_col)

    # Already NCHW: pure reshape, no transpose.
    return out_flat.reshape(N, Cout, H, W)


if __name__ == "__main__":
    # Small shapes implied by the module (dim=2 conv, NCHW input).
    N, Cin, H, W = 2, 4, 16, 16
    Cout, K = 8, 3

    key = jax.random.PRNGKey(0)
    kx, kw, kb = jax.random.split(key, 3)

    x = jax.random.normal(kx, (N, Cin, H, W), dtype=jnp.float32)

    # Deterministic Conv2d-style init (uniform within +/- 1/sqrt(fan_in)).
    fan_in = Cin * K * K
    bound = 1.0 / jnp.sqrt(jnp.float32(fan_in))
    weight = jax.random.uniform(
        kw, (Cout, Cin, K, K), minval=-bound, maxval=bound, dtype=jnp.float32)
    bias = jax.random.uniform(
        kb, (Cout,), minval=-bound, maxval=bound, dtype=jnp.float32)

    out = conv_block_forward(x, weight, bias)
    out = jax.block_until_ready(out)

    # Reference: same bf16-rounded operands, exact f32 conv (apples-to-apples with
    # the kernel's bf16 MXU multiplies + f32 accumulation).
    xq = x.astype(jnp.bfloat16).astype(jnp.float32)
    wq = weight.astype(jnp.bfloat16).astype(jnp.float32)
    ref = jax.lax.conv_general_dilated(
        xq, wq, window_strides=(1, 1), padding=((1, 1), (1, 1)),
        dimension_numbers=("NCHW", "OIHW", "NCHW"),
        precision=jax.lax.Precision.HIGHEST,
    ) + bias[None, :, None, None]
    ref = jnp.maximum(ref, 0.0)

    assert out.shape == (N, Cout, H, W)
    assert jnp.allclose(out, ref, atol=2e-3, rtol=2e-3), \
        float(jnp.max(jnp.abs(out - ref)))

    print("KERNEL_OK")
</pallas_src>

<mosaic_0001>
module attributes {stable_mosaic.version = 11 : i64} {
  func.func @kernel(%arg0: i32, %arg1: memref<1x4x384xbf16, #tpu.memory_space<vmem>>, %arg2: memref<8x36xbf16, #tpu.memory_space<vmem>>, %arg3: memref<1x256xbf16, #tpu.memory_space<vmem>>, %arg4: memref<1x256xbf16, #tpu.memory_space<vmem>>, %arg5: memref<8x1xf32, #tpu.memory_space<vmem>>, %arg6: memref<1x8x256xf32, #tpu.memory_space<vmem>>) attributes {dimension_semantics = [#tpu.dimension_semantics<parallel>], iteration_bounds = array<i64: 2>, scalar_prefetch = 0 : i64, scratch_operands = 0 : i64, tpu.core_type = #tpu.core_type<tc>, window_params = [{transform_indices = @transform_0, window_bounds = array<i64: 1, 4, 384>}, {pipeline_mode = #tpu.pipeline_mode<synchronous>, transform_indices = @transform_1, window_bounds = array<i64: 8, 36>}, {pipeline_mode = #tpu.pipeline_mode<synchronous>, transform_indices = @transform_2, window_bounds = array<i64: 1, 256>}, {pipeline_mode = #tpu.pipeline_mode<synchronous>, transform_indices = @transform_3, window_bounds = array<i64: 1, 256>}, {pipeline_mode = #tpu.pipeline_mode<synchronous>, transform_indices = @transform_4, window_bounds = array<i64: 8, 1>}, {transform_indices = @transform_5, window_bounds = array<i64: 1, 8, 256>}]} {
    %c0 = arith.constant 0 : index
    %c0_0 = arith.constant 0 : index
    %c0_1 = arith.constant 0 : index
    %0 = vector.load %arg1[%c0, %c0_0, %c0_1] : memref<1x4x384xbf16, #tpu.memory_space<vmem>>, vector<1x4x384xbf16>
    %1 = vector.shape_cast %0 : vector<1x4x384xbf16> to vector<4x384xbf16>
    %c0_2 = arith.constant 0 : index
    %c0_3 = arith.constant 0 : index
    %2 = vector.load %arg3[%c0_2, %c0_3] : memref<1x256xbf16, #tpu.memory_space<vmem>>, vector<1x256xbf16>
    %c0_4 = arith.constant 0 : index
    %c0_5 = arith.constant 0 : index
    %3 = vector.load %arg4[%c0_4, %c0_5] : memref<1x256xbf16, #tpu.memory_space<vmem>>, vector<1x256xbf16>
    %4 = vector.extract_strided_slice %1 {offsets = [0, 0], sizes = [4, 256], strides = [1, 1]} : vector<4x384xbf16> to vector<4x256xbf16>
    %5 = vector.broadcast %2 : vector<1x256xbf16> to vector<4x256xbf16>
    %6 = arith.mulf %4, %5 : vector<4x256xbf16>
    %7 = vector.extract_strided_slice %1 {offsets = [0, 1], sizes = [4, 256], strides = [1, 1]} : vector<4x384xbf16> to vector<4x256xbf16>
    %8 = vector.extract_strided_slice %1 {offsets = [0, 2], sizes = [4, 256], strides = [1, 1]} : vector<4x384xbf16> to vector<4x256xbf16>
    %9 = vector.broadcast %3 : vector<1x256xbf16> to vector<4x256xbf16>
    %10 = arith.mulf %8, %9 : vector<4x256xbf16>
    %11 = vector.extract_strided_slice %1 {offsets = [0, 16], sizes = [4, 256], strides = [1, 1]} : vector<4x384xbf16> to vector<4x256xbf16>
    %12 = vector.broadcast %2 : vector<1x256xbf16> to vector<4x256xbf16>
    %13 = arith.mulf %11, %12 : vector<4x256xbf16>
    %14 = vector.extract_strided_slice %1 {offsets = [0, 17], sizes = [4, 256], strides = [1, 1]} : vector<4x384xbf16> to vector<4x256xbf16>
    %15 = vector.extract_strided_slice %1 {offsets = [0, 18], sizes = [4, 256], strides = [1, 1]} : vector<4x384xbf16> to vector<4x256xbf16>
    %16 = vector.broadcast %3 : vector<1x256xbf16> to vector<4x256xbf16>
    %17 = arith.mulf %15, %16 : vector<4x256xbf16>
    %18 = vector.extract_strided_slice %1 {offsets = [0, 32], sizes = [4, 256], strides = [1, 1]} : vector<4x384xbf16> to vector<4x256xbf16>
    %19 = vector.broadcast %2 : vector<1x256xbf16> to vector<4x256xbf16>
    %20 = arith.mulf %18, %19 : vector<4x256xbf16>
    %21 = vector.extract_strided_slice %1 {offsets = [0, 33], sizes = [4, 256], strides = [1, 1]} : vector<4x384xbf16> to vector<4x256xbf16>
    %22 = vector.extract_strided_slice %1 {offsets = [0, 34], sizes = [4, 256], strides = [1, 1]} : vector<4x384xbf16> to vector<4x256xbf16>
    %23 = vector.broadcast %3 : vector<1x256xbf16> to vector<4x256xbf16>
    %24 = arith.mulf %22, %23 : vector<4x256xbf16>
    %25 = tpu.concatenate %6, %7, %10, %13, %14, %17, %20, %21, %24 in 0 : vector<4x256xbf16>, vector<4x256xbf16>, vector<4x256xbf16>, vector<4x256xbf16>, vector<4x256xbf16>, vector<4x256xbf16>, vector<4x256xbf16>, vector<4x256xbf16>, vector<4x256xbf16> -> vector<36x256xbf16>
    %c0_6 = arith.constant 0 : index
    %c0_7 = arith.constant 0 : index
    %26 = vector.load %arg2[%c0_6, %c0_7] : memref<8x36xbf16, #tpu.memory_space<vmem>>, vector<8x36xbf16>
    %cst = arith.constant dense<0.000000e+00> : vector<8x256xf32>
    %27 = tpu.matmul %26, %25, %cst {dimension_numbers = #tpu.dot_dimension_numbers<[1], [0], [0], [1], [0, 0, 1, 1], [], []>} : vector<8x36xbf16>, vector<36x256xbf16>, vector<8x256xf32> -> vector<8x256xf32>
    %c0_8 = arith.constant 0 : index
    %c0_9 = arith.constant 0 : index
    %28 = vector.load %arg5[%c0_8, %c0_9] : memref<8x1xf32, #tpu.memory_space<vmem>>, vector<8x1xf32>
    %29 = vector.broadcast %28 : vector<8x1xf32> to vector<8x256xf32>
    %30 = arith.addf %27, %29 : vector<8x256xf32>
    %cst_10 = arith.constant 0.000000e+00 : f32
    %31 = vector.broadcast %cst_10 : f32 to vector<8x256xf32>
    %32 = arith.maximumf %30, %31 : vector<8x256xf32>
    %c0_11 = arith.constant 0 : index
    %c0_12 = arith.constant 0 : index
    %c0_13 = arith.constant 0 : index
    %33 = vector.load %arg6[%c0_11, %c0_12, %c0_13] : memref<1x8x256xf32, #tpu.memory_space<vmem>>, vector<1x8x256xf32>
    %34 = vector.shape_cast %33 : vector<1x8x256xf32> to vector<8x256xf32>
    %35 = vector.shape_cast %32 : vector<8x256xf32> to vector<1x8x256xf32>
    tpu.vector_store %arg6[%c0_11, %c0_12, %c0_13], %35 {strides = array<i32>} : memref<1x8x256xf32, #tpu.memory_space<vmem>>, vector<1x8x256xf32>,
    return
  }
  func.func @transform_0(%arg0: i32) -> (i32, i32, i32) {
    %c0_i32 = arith.constant 0 : i32
    %c0_i32_0 = arith.constant 0 : i32
    %c0_i32_1 = arith.constant 0 : i32
    return %arg0, %c0_i32, %c0_i32_0 : i32, i32, i32
  }
  func.func @transform_1(%arg0: i32) -> (i32, i32) {
    %c0_i32 = arith.constant 0 : i32
    %c0_i32_0 = arith.constant 0 : i32
    %c0_i32_1 = arith.constant 0 : i32
    return %c0_i32, %c0_i32_0 : i32, i32
  }
  func.func @transform_2(%arg0: i32) -> (i32, i32) {
    %c0_i32 = arith.constant 0 : i32
    %c0_i32_0 = arith.constant 0 : i32
    %c0_i32_1 = arith.constant 0 : i32
    return %c0_i32, %c0_i32_0 : i32, i32
  }
  func.func @transform_3(%arg0: i32) -> (i32, i32) {
    %c0_i32 = arith.constant 0 : i32
    %c0_i32_0 = arith.constant 0 : i32
    %c0_i32_1 = arith.constant 0 : i32
    return %c0_i32, %c0_i32_0 : i32, i32
  }
  func.func @transform_4(%arg0: i32) -> (i32, i32) {
    %c0_i32 = arith.constant 0 : i32
    %c0_i32_0 = arith.constant 0 : i32
    %c0_i32_1 = arith.constant 0 : i32
    return %c0_i32, %c0_i32_0 : i32, i32
  }
  func.func @transform_5(%arg0: i32) -> (i32, i32, i32) {
    %c0_i32 = arith.constant 0 : i32
    %c0_i32_0 = arith.constant 0 : i32
    %c0_i32_1 = arith.constant 0 : i32
    return %arg0, %c0_i32, %c0_i32_0 : i32, i32, i32
  }
}

</mosaic_0001>

<bundles_post_ra>
// kernel: tpu_custom_call.1
= control target key start
LH: loop header
LB: loop body
LE: loop exit
PB: predicated region body
PF: predicated region fallthrough
CT: control target
= control target key end

     0   :  { %10 = vsyncpa [#allocation3], 0  ;;  %s1227_s0 = inlined_call_operand.hbm [shape: bf16[2,4,384], index: 0, kind: input, shape index: {}]   ;;  %s1228_s1 = inlined_call_operand.vmem [shape: bf16[8,36], index: 1, kind: input, shape index: {}]   ;;  %s1229_s2 = inlined_call_operand.vmem [shape: bf16[1,256], index: 2, kind: input, shape index: {}]   ;;  %s1230_s3 = inlined_call_operand.vmem [shape: bf16[1,256], index: 3, kind: input, shape index: {}]   ;;  %s1231_s4 = inlined_call_operand.vmem [shape: f32[8,1], index: 4, kind: input, shape index: {}]   ;;  %s1232_s5 = inlined_call_operand.hbm [shape: f32[2,8,256], index: 5, kind: output, shape index: {}]  }
   0x1   :  { %12 = vsyncpa [#allocation3 + $0x1], 0 }
   0x2   :  { %13 = vsyncpa [#allocation4], 0 }
   0x3   :  { %15 = vsyncpa [#allocation4 + $0x1], 0  ;;  %s986_s18 = smov 0   ;;  %s988_s19 = smov 0  }
   0x4   :  { %s990_s20 = smov 0   ;;  %s992_s21 = smov 0  }
   0x5 LB: > { %s1007_s22 = sadd.s32 4294967295, %s936_s21   ;;  %s755_s23 = sadd.s32 4294967294, %s936_s21   ;;  %s936_s21 = sphi %s992_s21, %s1246_s21   ;;  %s932_s20 = sphi %s990_s20, %s1245_s20   ;;  %s928_s19 = sphi %s988_s19, %s1244_s19   ;;  %s924_s18 = sphi %s986_s18, %s1243_s18  }
   0x6   : > { %s1011_s24 = sadd.s32 1, %s936_s21   ;;  %s28_s25 = sadd.s32 1, %s932_s20 }
   0x7   : > { %s25_s26 = ssub.s32 %s936_s21, %s1011_s24  ;;  %p35_p0 = scmp.ne.s32.totalorder %s932_s20, %s928_s19 }
   0x8   : > { %p26_p1 = scmp.eq.s32.totalorder %s25_s26, 0  ;;  %p36_p2 = scmp.eq.s32.totalorder %s936_s21, 0 }
   0x9   : > { %p41_p3 = scmp.ne.s32.totalorder %s928_s19, %s924_s18  ;;  %p42_p4 = scmp.eq.s32.totalorder %s1007_s22, 0 }
   0xa   : > { %s1023_s27 = scalar_select %p26_p1, %s932_s20, %s28_s25  }
   0xb   : > { %p37_p5 = por %p36_p2, %p35_p0  ;;  %p1025_p6 = por %p42_p4, %p41_p3 }
   0xc   : > { %p149_p7 = scmp.eq.s32.totalorder %s1007_s22, 1  ;;  %p155_p8 = scmp.eq.s32.totalorder %s755_s23, 1 }
   0xd   : > { %p786_p10 = scmp.lt.s32.totalorder %s936_s21, 2  ;;  %s187_s6 = sand.u32 1, %s932_s20  }
   0xe   : > { %p1032_p11 = por %p149_p7, %p35_p0  ;;  %p1036_p12 = por %p155_p8, %p41_p3 }
   0xf   : > { %s772_s7 = smul.u32 96, %s936_s21  ;;  %p1047_p13 = pnand %p786_p10, %p37_p5 }
  0x10   : > { %s1235_s29 = scalar_select %p1032_p11, 1, 0 }
  0x11   : > { %s1236_s30 = scalar_select %p1036_p12, 1, 0 }
  0x12   : > { %s771_s8 = smul.u32 6, %s187_s6  ;;  %s1045_s11 = scalar_lea.hbm %s1227_s0, %s772_s7 }
  0x13   : > { %s188_s15 = scalar_lea.sflag [#allocation3], %s187_s6  ;;  %s840_s16 = scalar_lea.hbm %s1045_s11, 96 }
  0x14   : > { %s191_s13 = scalar_lea.vmem [#allocation2], %s771_s8  ;;  %p841_p2 = scmp.ne.s32.totalorder %s1045_s11, %s840_s16 }
  0x15   : > { %s199_s14 = sshll.u32 %s191_s13, 4  ;;  %p842_p3 = pneg %p1047_p13  ;;  %s1052_s14 = int_to_ptr.vmem [resolvable:$true] %s199_s14 }
  0x16   : > { %s845_s25 = scalar_lea.hbm %s1227_s0, 192  ;;  %p846_p7 = scmp.lt.u32.totalorder %s1045_s11, %s1227_s0 }
  0x17   : > { %p843_p4 = pnand %p842_p3, %p841_p2  ;;  %p847_p8 = scmp.lt.u32.totalorder %s845_s25, %s840_s16 }
  0x18   : > { %p849_p9 = scmp.lt.u32.totalorder %s840_s16, %s1045_s11 }
  0x19   : > { %p844_p5 = pneg %p843_p4  ;;  %p848_p10 = por %p847_p8, %p846_p7 }
  0x1b   : > { %p850_p0 = por %p849_p9, %p848_p10 }
  0x1d   : > { %p851_p1 = pnand %p850_p0, %p844_p5 }
  0x1f   : > { %854 = shalt.err (!%p851_p1)
}
  0x20   : > { %s855_s6 = scalar_lea.vmem %s1052_s14, 96  ;;  %s938_s8 = smov [#allocation2]  }
  0x21   : > { %p856_p2 = scmp.ne.s32.totalorder %s1052_s14, %s855_s6  ;;  %s860_s9 = sshll.u32 %s938_s8, 4  ;;  %s861_s9 = int_to_ptr.vmem [resolvable:$false] %s860_s9 }
  0x22   : > { %s862_s10 = scalar_lea.vmem %s861_s9, 192  ;;  %p863_p11 = scmp.lt.s32.totalorder %s1052_s14, %s861_s9 }
  0x23   : > { %p858_p4 = pnand %p856_p2, %p842_p3  ;;  %p864_p7 = scmp.lt.s32.totalorder %s862_s10, %s855_s6 }
  0x25   : > { %p859_p12 = pneg %p858_p4  ;;  %p865_p8 = por %p864_p7, %p863_p11 }
  0x27   : > { %p866_p9 = pnand %p865_p8, %p859_p12 }
  0x29   : > { %869 = shalt.err (!%p866_p9)
}
  0x2a   : > { %781 = dma.hbm_to_vmem [thread:$0]  (!%p1047_p13), %s1045_s11, 96, %s1052_s14, %s188_s15  }
  0x2b   : > { %p1238_p0 = scmp.lt.s32.totalorder %s936_s21, 3  ;;  %p1239_p1 = scmp.ge.s32.totalorder %s936_s21, 1 }
  0x2d   : > { %p205_p3 = pnand %p1239_p1, %p1238_p0 }
  0x2e   : > { %s1085_s13 = sand.u32 (!%p205_p3), 1, %s928_s19  }
  0x2f   : > { %208 = sbr.rel (%p205_p3) target bundleno = 575 (0x23f), region = 40  ;;  %s211_s17 = scalar_lea.sflag (!%p205_p3), [#allocation3], %s1085_s13 }
  0x30   : > { %s773_s16 = smul.u32 (!%p205_p3), 6, %s1085_s13 }
  0x32   : > { %s214_s23 = scalar_lea.vmem (!%p205_p3), [#allocation2], %s773_s16 }
  0x36   : > { %915 = dma.done.wait (%p1025_p6), %s211_s17, 96  }
  0x37   : > { %917 = vsyncadd (%p1025_p6), %s211_s17, 4294967200  ;;  %v257_v0 = vlaneseq  ;;  %v939_v1 = vmov 1966171168   ;;  %v940_v6 = vmov 1983009808   ;;  %s941_s28 = smov 18  }
  0x38   : > { %v255_v2 = vunpack.c.l.s4 %v939_v1  ;;  %v286_v7 = vunpack.c.l.s4 %v940_v6  ;;  %v762_v8 = vld.sshfl [vmem:[%s1230_s3] sm:$0x11 pattern:$0x75316420]  ;;  %s942_s25 = smov 2   ;;  %s943_s26 = smov 32  }
  0x39   : > { %v258_v3 = vshrl.u32 %v257_v0, 7  ;;  %v302_v10 = vcombine.high %v762_v8, %v762_v8  ;;  %v761_v12 = vld.sshfl [vmem:[%s1229_s2] sm:$0x11 pattern:$0x75316420]  ;;  %s944_s7 = smov 16  }
  0x3a   : > { %v256_v4 = vunpack.c.0.s8 %v255_v2  ;;  %v253_v13 = vcombine.high %v761_v12, %v761_v12  ;;  %v287_v15 = vunpack.c.0.s8 %v286_v7  ;;  %v1099_v24 = vld [vmem:[%s214_s23] sm:$0x3f]  ;;  %s945_s6 = smov 34   ;;  %s946_s8 = smov 127   ;;  %vm358_vm0 = vcmask 146432  }
  0x3b   : > { %v273_v9 = vsub.s32 0, %v258_v3  ;;  %v386_v29 = vcombine.low %v1099_v24, %v1099_v24  ;;  %v465_v36 = vcombine.high %v1099_v24, %v1099_v24  ;;  %s947_s9 = smov 111   ;;  %s948_s10 = smov 95   ;;  %vm344_vm1 = vcmask 15360  }
  0x3c   : > { %v259_v5 = vsub.s32 %v256_v4, %v258_v3  ;;  %v1101_v25 = vsub.s32 %v287_v15, %v258_v3  ;;  %vm365_vm2 = vcmask 261120   ;;  %vm351_vm3 = vcmask 130048   ;;  %s949_s16 = smov 110   ;;  %s950_s17 = smov 126  }
  0x3d   : > { %s951_s23 = smov 96   ;;  %s952_s11 = smov 112   ;;  %vm372_vm4 = vcmask 277504   ;;  %vm408_vm5 = vcmask 1039360   ;;  %vm573_vm6 = vcmask 1041408   ;;  %vm435_vm7 = vcmask 1031168  }
  0x3e   : > { %v309_v11 = vrot.slane %v762_v8, %v259_v5  ;;  %v260_v14 = vrot.slane %v761_v12, %v259_v5  ;;  %v316_v16 = vrot.slane %v302_v10, %v259_v5  ;;  %v267_v18 = vrot.slane %v253_v13, %v259_v5  ;;  %s954_s12 = smov 94   ;;  %p1240_p11 = scmp.ne.s32.totalorder %s1235_s29, 0 }
  0x3f   : > { %v1110_v33 = vrot.slane %v386_v29, %v1101_v25  ;;  %v400_v35 = vrot.slane %v1099_v24, %v1101_v25  ;;  %v472_v38 = vrot.slane %v465_v36, %v1101_v25  ;;  %vm462_vm8 = vcmask 916480  }
  0x40   : > { %v318_v17 = vpack.i.b16 %v309_v11, %v309_v11  ;;  %v269_v19 = vpack.i.b16 %v260_v14, %v260_v14  ;;  %v325_v21 = vpack.i.b16 %v316_v16, %v316_v16  ;;  %v276_v23 = vpack.i.b16 %v267_v18, %v267_v18 }
  0x41   : > { %v401_v34 = vcombine.high %v1110_v33, %v1110_v33  ;;  %v473_v37 = vcombine.high %v400_v35, %v400_v35  ;;  %v537_v39 = vcombine.low %v400_v35, %v400_v35  ;;  %v953_v16 = vmov 0  }
  0x42   : > { %v323_v20 = vrot.slane %v318_v17, %v273_v9  ;;  %v274_v22 = vrot.slane %v269_v19, %v273_v9  ;;  %v330_v26 = vrot.slane %v325_v21, %v273_v9  ;;  %v281_v27 = vrot.slane %v276_v23, %v273_v9  ;;  %657 = vmatprep.mubr.bf16.mxu0 %v953_v16  ;;  %v609_v21 = vld [vmem:[%s1231_s4] sm:$0xff] }
  0x43   : > { %836 = vset.pattern.permute.xlu1 %v953_v16  ;;  %837 = vset.pattern.permute.xlu0 %v953_v16  ;;  %v536_v18 = vcombine.low %v1110_v33, %v1110_v33  ;;  %vm585_vm9 = vcmask 1045504   ;;  %vm580_vm10 = vcmask 1043456   ;;  %vm480_vm11 = vcmask 908288  }
  0x44   : > { %v333_v28 = vcombine.low %v323_v20, %v330_v26  ;;  %v284_v30 = vcombine.low %v274_v22, %v281_v27  ;;  %vm506_vm12 = vcmask 900096   ;;  %vm544_vm13 = vcmask 777216  }
  0x45   : > { %vm533_vm14 = vcmask 785408   ;;  %vm570_vm15 = vcmask 769024  }
  0x46   : > { %v340_v31 = vrot.slane %v333_v28, %v1101_v25  ;;  %v1107_v32 = vrot.slane %v284_v30, %v1101_v25 }
  0x48   : > { %355 = vrot.lane.b32.xlu1 %v340_v31, %s941_s28  ;;  %341 = vrot.lane.b32.xlu0 %v340_v31, %s942_s25 }
  0x4c   : > { %362 = vrot.lane.b32.xlu1 %v1107_v32, %s943_s26  ;;  %348 = vrot.lane.b32.xlu0 %v1107_v32, %s944_s7  ;;  %s760_s26 = sshll.u32 %s1085_s13, 4  ;;  %s770_s7 = sshll.u32 %s1007_s22, 8 }
  0x4d   : > { %s671_s22 = scalar_lea.sflag [#allocation4], %s1085_s13 }
  0x50   : > { %369 = vrot.lane.b32.xlu0 %v340_v31, %s945_s6  ;;  %404 = vrot.lane.b32.xlu1 %v401_v34, %s946_s8  ;;  %s240_s6 = scalar_lea.vmem [#allocation5], %s760_s26 }
  0x54   : > { %406 = vrot.lane.b32.xlu0 %v400_v35, %s946_s8  ;;  %402 = vrot.lane.b32.xlu1 %v1110_v33, %s946_s8  ;;  %s685_s8 = sshll.u32 %s240_s6, 4  ;;  %s1185_s8 = int_to_ptr.vmem [resolvable:$true] %s685_s8 }
  0x58   : > { %476 = vrot.lane.b32.xlu0 %v473_v37, %s947_s9  ;;  %478 = vrot.lane.b32.xlu1 %v472_v38, %s947_s9 }
  0x5c   : > { %474 = vrot.lane.b32.xlu0 %v400_v35, %s947_s9  ;;  %540 = vrot.lane.b32.xlu1 %v1110_v33, %s948_s10  ;;  %v293_v35 = vmul.bf16 %v1107_v32, %v1099_v24 }
  0x5e   : > { %v383_v38 = vrot.slane %v293_v35, %v1101_v25 }
  0x60   : > { %542 = vrot.lane.b32.xlu0 %v537_v39, %s948_s10 }
  0xba   : > { %v356_v40 = vpop.permute.xlu1 %355  ;;  %v342_v41 = vpop.permute.xlu0 %341 }
  0xbb   : > { %v357_v42 = vrot.slane %v356_v40, 6  ;;  %v343_v43 = vrot.slane %v342_v41, 6 }
  0xbd   : > { %v359_v44 = vsel %vm358_vm0, %v357_v42, %v356_v40  ;;  %v345_v45 = vsel %vm344_vm1, %v343_v43, %v342_v41  ;;  %v384_v41 = vcombine.high %v383_v38, %v383_v38  ;;  %vm615_vm0 = vcmask 293888  }
  0xbe   : > { %v361_v46 = vmul.bf16 %v359_v44, %v1099_v24  ;;  %v347_v47 = vmul.bf16 %v345_v45, %v1099_v24  ;;  %v363_v48 = vpop.permute.xlu1 %362  ;;  %v349_v49 = vpop.permute.xlu0 %348 }
  0xbf   : > { %v364_v50 = vrot.slane %v363_v48, 6  ;;  %v350_v51 = vrot.slane %v349_v49, 6 }
  0xc0   : > { %v498_v52 = vrot.slane %v361_v46, %v1101_v25  ;;  %v419_v53 = vrot.slane %v347_v47, %v1101_v25  ;;  %v484_v60 = vcombine.low %v361_v46, %v361_v46  ;;  %v412_v61 = vcombine.high %v347_v47, %v347_v47 }
  0xc1   : > { %v366_v54 = vsel %vm365_vm2, %v364_v50, %v363_v48  ;;  %v352_v55 = vsel %vm351_vm3, %v350_v51, %v349_v49 }
  0xc2   : > { %v368_v56 = vmul.bf16 %v366_v54, %v1099_v24  ;;  %v354_v57 = vmul.bf16 %v352_v55, %v1099_v24  ;;  %504 = vrot.lane.b32.xlu1 %v498_v52, %s949_s16  ;;  %431 = vrot.lane.b32.xlu0 %v419_v53, %s950_s17  ;;  %v427_v63 = vcombine.low %v419_v53, %v419_v53  ;;  %v370_v1 = vpop.permute.xlu0 %369  ;;  %v405_v23 = vpop.permute.xlu1 %404 }
  0xc3   : > { %v491_v2 = vrot.slane %v484_v60, %v1101_v25  ;;  %v426_v3 = vrot.slane %v412_v61, %v1101_v25  ;;  %v371_v4 = vrot.slane %v370_v1, 6 }
  0xc4   : > { %v439_v58 = vcombine.low %v354_v57, %v354_v57  ;;  %v517_v59 = vrot.slane %v368_v56, %v1101_v25  ;;  %v453_v0 = vrot.slane %v354_v57, %v1101_v25  ;;  %v510_v6 = vcombine.high %v368_v56, %v368_v56 }
  0xc5   : > { %v428_v7 = vcombine.low %v426_v3, %v426_v3  ;;  %v373_v8 = vsel %vm372_vm4, %v371_v4, %v370_v1  ;;  %v499_v13 = vcombine.high %v491_v2, %v491_v2 }
  0xc6   : > { %529 = vrot.lane.b32.xlu0 %v517_v59, %s951_s23  ;;  %v446_v62 = vrot.slane %v439_v58, %v1101_v25  ;;  %v455_v5 = vcombine.low %v453_v0, %v453_v0  ;;  %v525_v9 = vcombine.low %v517_v59, %v517_v59  ;;  %v375_v10 = vmul.bf16 %v373_v8, %v1099_v24  ;;  %v407_v22 = vpop.permute.xlu0 %406  ;;  %v403_v27 = vpop.permute.xlu1 %402 }
  0xc7   : > { %v524_v12 = vrot.slane %v510_v6, %v1101_v25  ;;  %v410_v42 = vsel %vm408_vm5, %v405_v23, %v407_v22  ;;  %v409_v46 = vsel %vm408_vm5, %v403_v27, %v405_v23 }
  0xc8   : > { %458 = vrot.lane.b32.xlu1 %v446_v62, %s952_s11  ;;  %v454_v11 = vcombine.low %v446_v62, %v446_v62  ;;  %v555_v15 = vrot.slane %v375_v10, %v1101_v25  ;;  %v548_v17 = vcombine.high %v375_v10, %v375_v10  ;;  %v579_v45 = vsel %vm573_vm6, %v384_v41, %v410_v42 }
  0xc9   : > { %v526_v14 = vcombine.low %v524_v12, %v524_v12  ;;  %v576_v50 = vsel %vm573_vm6, %v383_v38, %v409_v46 }
  0xca   : > { %429 = vrot.lane.b32.xlu0 %v427_v63, %s950_s17  ;;  %v562_v19 = vrot.slane %v548_v17, %v1101_v25  ;;  %v563_v20 = vcombine.high %v555_v15, %v555_v15  ;;  %v477_v26 = vpop.permute.xlu0 %476  ;;  %v479_v29 = vpop.permute.xlu1 %478 }
  0xcb   : > { %v482_v56 = vsel %vm480_vm11, %v477_v26, %v479_v29 }
  0xcc   : > { %500 = vrot.lane.b32.xlu1 %v491_v2, %s949_s16 }
  0xce   : > { %460 = vrot.lane.b32.xlu0 %v455_v5, %s952_s11  ;;  %v475_v28 = vpop.permute.xlu0 %474  ;;  %v541_v31 = vpop.permute.xlu1 %540 }
  0xcf   : > { %v481_v61 = vsel %vm480_vm11, %v475_v28, %v477_v26 }
  0xd0   : > { %433 = vrot.lane.b32.xlu1 %v428_v7, %s950_s17  ;;  %s870_s17 = scalar_lea.vmem %s1185_s8, 256 }
  0xd1   : > { %p871_p6 = scmp.ne.s32.totalorder %s1185_s8, %s870_s17 }
  0xd2   : > { %527 = vrot.lane.b32.xlu0 %v525_v9, %s951_s23  ;;  %v543_v30 = vpop.permute.xlu0 %542 }
  0xd3   : > { %v546_v63 = vsel %vm544_vm13, %v541_v31, %v543_v30  ;;  %p872_p12 = pnand %p871_p6, %p1240_p11 }
  0xd4   : > { %456 = vrot.lane.b32.xlu1 %v454_v11, %s952_s11 }
  0xd5   : > { %p873_p13 = pneg %p872_p12 }
  0xd6   : > { %502 = vrot.lane.b32.xlu0 %v499_v13, %s949_s16  ;;  %s1183_s16 = scalar_lea.hbm %s1232_s5, %s770_s7 }
  0xd8   : > { %531 = vrot.lane.b32.xlu1 %v526_v14, %s951_s23  ;;  %v608_v14 = vld [vmem:[%s1228_s1] sm:$0xf]  ;;  %s955_s23 = smov [#allocation5]  }
  0xd9   : > { %s874_s11 = sshll.u32 %s955_s23, 4  ;;  %s875_s11 = int_to_ptr.vmem [resolvable:$false] %s874_s11 }
  0xda   : > { %564 = vrot.lane.b32.xlu0 %v555_v15, %s954_s12  ;;  %p877_p5 = scmp.lt.s32.totalorder %s1185_s8, %s875_s11 }
  0xdc   : > { %538 = vrot.lane.b32.xlu1 %v536_v18, %s948_s10 }
  0xde   : > { %568 = vrot.lane.b32.xlu0 %v562_v19, %s954_s12 }
  0xe0   : > { %566 = vrot.lane.b32.xlu1 %v563_v20, %s954_s12  ;;  %s876_s12 = scalar_lea.vmem %s875_s11, 512 }
  0xe1   : > { %p878_p10 = scmp.lt.s32.totalorder %s876_s12, %s870_s17 }
  0xe3   : > { %p879_p2 = por %p878_p10, %p877_p5 }
  0xe4   : > { %612 = vperm.xlu1 %836, %v609_v21  }
  0xe5   : > { %p880_p4 = pnand %p879_p2, %p873_p13 }
 0x134   : > { %v432_v33 = vpop.permute.xlu0 %431  ;;  %v505_v34 = vpop.permute.xlu1 %504 }
 0x138   : > { %v530_v36 = vpop.permute.xlu0 %529 }
 0x13a   : > { %v459_v37 = vpop.permute.xlu1 %458 }
 0x13c   : > { %v430_v39 = vpop.permute.xlu0 %429 }
 0x13d   : > { %v436_v24 = vsel %vm435_vm7, %v430_v39, %v432_v33 }
 0x13e   : > { %v501_v40 = vpop.permute.xlu1 %500  ;;  %v582_v53 = vsel %vm580_vm10, %v576_v50, %v436_v24 }
 0x140   : > { %v461_v43 = vpop.permute.xlu0 %460 }
 0x141   : > { %v464_v32 = vsel %vm462_vm8, %v459_v37, %v461_v43 }
 0x142   : > { %v434_v44 = vpop.permute.xlu1 %433 }
 0x143   : > { %v437_v47 = vsel %vm435_vm7, %v432_v33, %v434_v44 }
 0x144   : > { %v528_v25 = vpop.permute.xlu0 %527  ;;  %v584_v48 = vsel %vm580_vm10, %v579_v45, %v437_v47 }
 0x145   : > { %v590_v49 = vsel %vm585_vm9, %v584_v48, %v464_v32  ;;  %v534_v4 = vsel %vm533_vm14, %v528_v25, %v530_v36 }
 0x146   : > { %v457_v51 = vpop.permute.xlu1 %456  ;;  %625 = vmatprep.subr.bf16.mxu0 %v590_v49 }
 0x147   : > { %v463_v52 = vsel %vm462_vm8, %v457_v51, %v459_v37 }
 0x148   : > { %v503_v54 = vpop.permute.xlu0 %502  ;;  %v587_v55 = vsel %vm585_vm9, %v582_v53, %v463_v52 }
 0x149   : > { %v507_v57 = vsel %vm506_vm12, %v501_v40, %v503_v54  ;;  %v508_v58 = vsel %vm506_vm12, %v503_v54, %v505_v34  ;;  %626 = vmatpush1.bf16.msra.mxu0 %v587_v55 }
 0x14a   : > { %v597_v59 = vsel %vm573_vm6, %v482_v56, %v508_v58  ;;  %v532_v60 = vpop.permute.xlu1 %531  ;;  %v594_v0 = vsel %vm573_vm6, %v481_v61, %v507_v57 }
 0x14b   : > { %v535_v62 = vsel %vm533_vm14, %v530_v36, %v532_v60  ;;  %v599_v7 = vsel %vm580_vm10, %v594_v0, %v534_v4 }
 0x14c   : > { %v565_v1 = vpop.permute.xlu0 %564  ;;  %v601_v2 = vsel %vm580_vm10, %v597_v59, %v535_v62 }
 0x14d   : > { %v606_v3 = vsel %vm585_vm9, %v601_v2, %v546_v63 }
 0x14e   : > { %v539_v5 = vpop.permute.xlu1 %538  ;;  %627 = vmatprep.subr.bf16.mxu0 %v606_v3 }
 0x14f   : > { %v545_v6 = vsel %vm544_vm13, %v539_v5, %v541_v31 }
 0x150   : > { %v603_v8 = vsel %vm585_vm9, %v599_v7, %v545_v6  ;;  %v569_v9 = vpop.permute.xlu0 %568 }
 0x151   : > { %628 = vmatpush1.bf16.msra.mxu0 %v603_v8 }
 0x152   : > { %v567_v10 = vpop.permute.xlu1 %566 }
 0x153   : > { %v571_v11 = vsel %vm570_vm15, %v565_v1, %v567_v10  ;;  %v572_v12 = vsel %vm570_vm15, %v567_v10, %v569_v9 }
 0x154   : > { %763 = vmatprep.subr.msk.bf16.mxu0 %vm573_vm6, %v572_v12  ;;  %v620_v13 = vsel %vm573_vm6, %v571_v11, 0 }
 0x155   : > { %630 = vmatpush1.bf16.msra.mxu0 %v620_v13 }
 0x158   : > { %764 = vmatmul.mubr.msk.bf16.vlgmr.msra.gmra.mrb[0].mxu0 %vm615_vm0, %v608_v14 }
 0x163   : > { %v613_v15 = vpop.permute.xlu1 %612 }
 0x22b   : > { %v659_v16 = vpop.f32.mrb[0].mxu0 }
 0x22c   : > { %v660_v17 = vadd.f32 %v659_v16, %v613_v15  ;;  %v661_v18 = vpop.f32.mrb[1].mxu0 }
 0x22d   : > { %v662_v19 = vadd.f32 %v661_v18, %v613_v15  ;;  %v663_v20 = vpop.f32.mrb[2].mxu0 }
 0x22e   : > { %v666_v21 = vmax.f32 %v660_v17, 0.0  ;;  %v664_v22 = vpop.f32.mrb[3].mxu0 }
 0x22f   : > { %v667_v23 = vmax.f32 %v662_v19, 0.0 }
 0x230   : > { %668 = vst [vmem:[%s240_s6] sm:$0xff] %v666_v21 }
 0x231   : > { %669 = vst [vmem:[%s240_s6 + $0x8] sm:$0xff] %v667_v23 }
 0x232   : > { %883 = shalt.err (!%p880_p4)
}
 0x233   : > { %s884_s13 = scalar_lea.hbm %s1183_s16, 256  ;;  %s888_s28 = scalar_lea.hbm %s1232_s5, 512 }
 0x234   : > { %p885_p7 = scmp.ne.s32.totalorder %s1183_s16, %s884_s13  ;;  %p889_p0 = scmp.lt.u32.totalorder %s1183_s16, %s1232_s5 }
 0x235   : > { %p890_p1 = scmp.lt.u32.totalorder %s888_s28, %s884_s13  ;;  %p892_p6 = scmp.lt.u32.totalorder %s884_s13, %s1183_s16 }
 0x236   : > { %p886_p8 = pnand %p885_p7, %p1240_p11 }
 0x237   : > { %p891_p3 = por %p890_p1, %p889_p0 }
 0x238   : > { %p887_p9 = pneg %p886_p8 }
 0x239   : > { %p893_p12 = por %p892_p6, %p891_p3 }
 0x23b   : > { %p894_p13 = pnand %p893_p12, %p887_p9 }
 0x23d   : > { %897 = shalt.err (!%p894_p13)
}
 0x23e   : > { %776 = dma.vmem_to_hbm [thread:$0]  (%p1240_p11), %s1185_s8, 256, %s1183_s16, %s671_s22  }
 0x23f PF: > { %s697_s7 = sand.u32 1, %s924_s18   ;;  %p1241_p5 = scmp.ne.s32.totalorder %s1236_s30, 0 }
 0x240   : > { %p1242_p10 = scmp.ge.s32.totalorder %s936_s21, 2  ;;  %s698_s6 = scalar_lea.sflag [#allocation4], %s697_s7 }
 0x242   : > { %p783_p2 = pnand %p1242_p10, %p1241_p5 }
 0x244   : > { %919 = dma.done.wait (!%p783_p2), %s698_s6, 256  }
 0x245   : > { %921 = vsyncadd (!%p783_p2), %s698_s6, 4294967040  ;;  %p18_p4 = scmp.ge.s32.totalorder %s1011_s24, 4   ;;  %s1243_s18 = smov %s928_s19 }
 0x246   : > { %s1244_s19 = smov %s932_s20  ;;  %s1245_s20 = smov %s1023_s27 }
 0x247   : > { %s1246_s21 = smov %s1011_s24  ;;  %20 = sbr.rel (!%p18_p4) target bundleno = 5 (0x5), region = 85 }
 0x24e   :  { %703 = vsyncpa [#allocation3], 1 }
 0x24f   :  { %705 = vsyncpa [#allocation3 + $0x1], 1 }
 0x250   :  { %706 = vsyncpa [#allocation4], 1 }
 0x251   :  { %708 = vsyncpa [#allocation4 + $0x1], 1 }

</bundles_post_ra>
